<compile_context>
chip_gen: v6e
topology: v6e:2x2x1
jax: 0.10.0
libtpu: 0.0.40
codegen_flags: <defaults>
</compile_context>

<pallas_src>
import functools

import jax
import jax.numpy as jnp
from jax.experimental import pallas as pl
from jax.experimental.pallas import tpu as pltpu

BN_EPS = 1e-5
MATMUL_DTYPE = jnp.bfloat16   # MXU input dtype; accumulation is always f32
LANE = 128                    # lane width  (last-dim alignment for hidden/out)
BF16_SUBLANE = 16             # bf16 packs (16, 128) per vreg
TB_MAX = 512                  # batch tile: amortizes ~0.35us/step overhead while
                              # keeping >=2 grid steps once batch > 512 (v7x 2 TCs)


def _round_up(x, m):
    return ((x + m - 1) // m) * m


def _choose_tiles(batch):
    """Batch tile (multiple of 16) and padded batch (multiple of the tile)."""
    b16 = _round_up(max(batch, 1), BF16_SUBLANE)
    tb = min(TB_MAX, b16)
    b_pad = _round_up(batch, tb)
    return tb, b_pad


# ---------------- Pallas kernel ----------------

def _mlp_kernel(x_ref, w0_ref, ws_ref, b_ref, o_ref, *, n_layers):
    """Fused MLP: n_layers of (h @ W + b), ReLU between layers (BN pre-folded).

    x_ref  : (TB, IN)     bf16  activation tile (real/narrow feature width)
    w0_ref : (IN, D)      bf16  first-layer weight (resident across grid)
    ws_ref : (L-1, D, D)  bf16  remaining BN-folded weights (resident)
    b_ref  : (L, 1, D)    f32   BN-folded biases (resident)
    o_ref  : (TB, D)      bf16  output tile (real data in first out_dim cols)
    """
    y = jnp.dot(x_ref[...], w0_ref[...], preferred_element_type=jnp.float32)
    y = y + b_ref[0]                                        # (1, D) broadcast, f32
    for l in range(1, n_layers):                            # static unroll, L tiny
        h = jnp.maximum(y, 0.0).astype(x_ref.dtype)         # ReLU f32 -> bf16 for MXU
        y = jnp.dot(h, ws_ref[l - 1], preferred_element_type=jnp.float32)
        y = y + b_ref[l]
    o_ref[...] = y.astype(o_ref.dtype)


def _fused_mlp(x_pad, w0, ws, bs, tb):
    """x_pad: (B_pad, IN) bf16, w0: (IN, D) bf16, ws: (L-1, D, D) bf16,
    bs: (L, 1, D) f32.  Returns (B_pad, D) bf16."""
    B_pad, IN = x_pad.shape
    D = w0.shape[1]
    Lm1 = ws.shape[0]
    L = Lm1 + 1
    grid = (B_pad // tb,)

    cost = pl.CostEstimate(
        flops=2 * B_pad * (IN * D + Lm1 * D * D),
        transcendentals=0,
        bytes_accessed=(x_pad.size * 2 + w0.size * 2 + ws.size * 2
                        + bs.size * 4 + B_pad * D * 2),
    )

    return pl.pallas_call(
        functools.partial(_mlp_kernel, n_layers=L),
        out_shape=jax.ShapeDtypeStruct((B_pad, D), MATMUL_DTYPE),
        grid_spec=pltpu.PrefetchScalarGridSpec(
            num_scalar_prefetch=0,
            grid=grid,
            in_specs=[
                pl.BlockSpec((tb, IN), lambda i: (i, 0)),        # activations: tiled over batch
                pl.BlockSpec((IN, D), lambda i: (0, 0)),         # first weight: resident
                pl.BlockSpec((Lm1, D, D), lambda i: (0, 0, 0)),  # other weights: resident
                pl.BlockSpec((L, 1, D), lambda i: (0, 0, 0)),    # biases: resident
            ],
            out_specs=pl.BlockSpec((tb, D), lambda i: (i, 0)),
        ),
        compiler_params=pltpu.CompilerParams(
            dimension_semantics=("parallel",),                   # megacore-shardable batch axis
        ),
        cost_estimate=cost,
    )(x_pad, w0, ws, bs)


# ---------------- Parameter construction (deterministic) ----------------

def init_linear_params(key, in_dim, out_dim):
    """PyTorch nn.Linear default init: U(-1/sqrt(fan_in), 1/sqrt(fan_in)).
    Stored as (in_dim, out_dim) so the kernel computes x @ W."""
    kw, kb = jax.random.split(key)
    bound = 1.0 / jnp.sqrt(jnp.float32(in_dim))
    w = jax.random.uniform(kw, (in_dim, out_dim), jnp.float32, -bound, bound)
    b = jax.random.uniform(kb, (out_dim,), jnp.float32, -bound, bound)
    return w, b


def init_mlp_params(key, in_dim, out_dim, hidden_dim, hidden_layers):
    """Mirrors construct_mlp: hidden_layers LinearBlocks + one output Linear.
    BN running stats / affine are randomized (as after training) so the BN fold
    is actually exercised by the correctness check below."""
    assert hidden_layers >= 1
    params = {"blocks": [], "out": None}
    dims_in = [in_dim] + [hidden_dim] * (hidden_layers - 1)
    keys = jax.random.split(key, hidden_layers + 1)
    for i, d_in in enumerate(dims_in):
        kw, kg, kb2, km, kv = jax.random.split(keys[i], 5)
        w, b = init_linear_params(kw, d_in, hidden_dim)
        params["blocks"].append({
            "w": w, "b": b,
            "gamma": 1.0 + 0.1 * jax.random.normal(kg, (hidden_dim,), jnp.float32),
            "beta": 0.1 * jax.random.normal(kb2, (hidden_dim,), jnp.float32),
            "running_mean": 0.1 * jax.random.normal(km, (hidden_dim,), jnp.float32),
            "running_var": 1.0 + 0.1 * jax.random.uniform(kv, (hidden_dim,), jnp.float32),
        })
    params["out"] = init_linear_params(keys[-1], hidden_dim, out_dim)
    return params


def prepare_params(params):
    """One-time prep: fold BN into the following layer, pad hidden/output dims
    to a common lane-aligned D (input dim only to the bf16 sublane pack of 16),
    stack and cast weights to bf16, keep biases in f32."""
    blocks = params["blocks"]
    w_out, b_out = params["out"]

    # Fold BN of block i (applied after its ReLU) into layer i+1's linear:
    #  a*s + t  ->  W' = s[:,None]*W,  b' = t@W + b.
    ws, bs = [], []
    s_prev, t_prev = None, None
    for blk in blocks:
        w, b = blk["w"], blk["b"]
        if s_prev is not None:
            b = t_prev @ w + b
            w = s_prev[:, None] * w
        ws.append(w)
        bs.append(b)
        inv_std = jax.lax.rsqrt(blk["running_var"] + BN_EPS)
        s_prev = blk["gamma"] * inv_std
        t_prev = blk["beta"] - blk["running_mean"] * s_prev
    # Output linear absorbs the last block's BN.
    bs.append(t_prev @ w_out + b_out)
    ws.append(s_prev[:, None] * w_out)

    # Lane-aligned width for hidden/output features; narrow width for the input.
    dims = [w.shape[1] for w in ws] + [w.shape[0] for w in ws[1:]]
    D = _round_up(max(dims), LANE)
    IN = _round_up(ws[0].shape[0], BF16_SUBLANE)

    def pad_to(w, rows, cols):
        return jnp.zeros((rows, cols), jnp.float32).at[: w.shape[0], : w.shape[1]].set(w)

    def pad_b(b):
        return jnp.zeros((1, D), jnp.float32).at[0, : b.shape[0]].set(b)

    w0 = pad_to(ws[0], IN, D).astype(MATMUL_DTYPE)                       # (IN, D)   bf16
    ws_stack = jnp.stack([pad_to(w, D, D) for w in ws[1:]]).astype(MATMUL_DTYPE)  # (L-1,D,D)
    bs_stack = jnp.stack([pad_b(b) for b in bs])                          # (L, 1, D) f32
    return {"w0": w0, "ws": ws_stack, "bs": bs_stack}


# ---------------- MLP forward (model_type == 'FP') ----------------

@functools.partial(jax.jit, static_argnames=("fp_dim", "out_dim"))
def mlp_forward_fp(fp_flat, prepared, fp_dim, out_dim):
    # data.fp arrives flattened; reshape to (batch, fp_dim) exactly like the module.
    batch = fp_flat.shape[0] // fp_dim
    x = fp_flat.reshape(batch, -1)

    IN = prepared["w0"].shape[0]
    tb, b_pad = _choose_tiles(batch)

    # Only pad batch (to the tile) and features (to the bf16 sublane pack) --
    # NOT to the 128-lane D; the kernel feeds the narrow tile straight to the MXU.
    x_pad = jnp.pad(x.astype(MATMUL_DTYPE),
                    ((0, b_pad - batch), (0, IN - fp_dim)))

    out_pad = _fused_mlp(x_pad, prepared["w0"], prepared["ws"], prepared["bs"], tb)
    return out_pad[:batch, :out_dim].astype(jnp.float32)


# ---------------- Pure-JAX reference (unfused, f32) ----------------

def mlp_forward_reference(x, params):
    h = x
    for blk in params["blocks"]:
        y = jnp.maximum(h @ blk["w"] + blk["b"], 0.0)                  # Linear + ReLU
        inv_std = jax.lax.rsqrt(blk["running_var"] + BN_EPS)           # Dropout = id (eval)
        h = (y - blk["running_mean"]) * inv_std * blk["gamma"] + blk["beta"]
    w_out, b_out = params["out"]
    return h @ w_out + b_out


# ---------------- Main ----------------

if __name__ == "__main__":
    # args equivalent: model='FP', fp_dim=32, grover_fp_dim=0 (unused for FP),
    # hidden_channels=32, num_assays=8, num_layers=2, dropout=0.1
    fp_dim = 32
    hidden_dim = 32
    num_assays = 8
    num_layers = 2

    key = jax.random.PRNGKey(0)
    k_data, k_params = jax.random.split(key)

    params = init_mlp_params(k_params, fp_dim, num_assays, hidden_dim, num_layers)
    prepared = prepare_params(params)   # one-time: BN fold + pad + stack + bf16 cast

    def run_check(batch, data_key):
        # flattened fingerprints, as the module expects (shape (batch * fp_dim,))
        fp_flat = jax.random.normal(data_key, (batch * fp_dim,), jnp.float32)
        out = mlp_forward_fp(fp_flat, prepared, fp_dim, num_assays)
        out = jax.block_until_ready(out)
        ref = mlp_forward_reference(fp_flat.reshape(batch, fp_dim), params)
        assert out.shape == (batch, num_assays), out.shape
        assert out.dtype == jnp.float32
        assert bool(jnp.all(jnp.isfinite(out)))
        max_err = float(jnp.max(jnp.abs(out - ref)))
        assert jnp.allclose(out, ref, atol=5e-2, rtol=5e-2), f"max abs err {max_err}"

    run_check(batch=4, data_key=k_data)                  # single grid step
    run_check(batch=520, data_key=jax.random.PRNGKey(1)) # TB=512 path, 2 grid steps

    print("KERNEL_OK")
</pallas_src>

<mosaic_0001>
module attributes {stable_mosaic.version = 11 : i64} {
  func.func @_mlp_kernel(%arg0: i32, %arg1: memref<16x32xbf16, #tpu.memory_space<vmem>>, %arg2: memref<32x128xbf16, #tpu.memory_space<vmem>>, %arg3: memref<2x128x128xbf16, #tpu.memory_space<vmem>>, %arg4: memref<3x1x128xf32, #tpu.memory_space<vmem>>, %arg5: memref<16x128xbf16, #tpu.memory_space<vmem>>) attributes {dimension_semantics = [#tpu.dimension_semantics<parallel>], iteration_bounds = array<i64: 1>, scalar_prefetch = 0 : i64, scratch_operands = 0 : i64, tpu.core_type = #tpu.core_type<tc>, window_params = [{transform_indices = @transform_0, window_bounds = array<i64: 16, 32>}, {pipeline_mode = #tpu.pipeline_mode<synchronous>, transform_indices = @transform_1, window_bounds = array<i64: 32, 128>}, {pipeline_mode = #tpu.pipeline_mode<synchronous>, transform_indices = @transform_2, window_bounds = array<i64: 2, 128, 128>}, {pipeline_mode = #tpu.pipeline_mode<synchronous>, transform_indices = @transform_3, window_bounds = array<i64: 3, 1, 128>}, {transform_indices = @transform_4, window_bounds = array<i64: 16, 128>}]} {
    %c0 = arith.constant 0 : index
    %c0_0 = arith.constant 0 : index
    %0 = vector.load %arg1[%c0, %c0_0] : memref<16x32xbf16, #tpu.memory_space<vmem>>, vector<16x32xbf16>
    %c0_1 = arith.constant 0 : index
    %c0_2 = arith.constant 0 : index
    %1 = vector.load %arg2[%c0_1, %c0_2] : memref<32x128xbf16, #tpu.memory_space<vmem>>, vector<32x128xbf16>
    %cst = arith.constant dense<0.000000e+00> : vector<16x128xf32>
    %2 = tpu.matmul %0, %1, %cst {dimension_numbers = #tpu.dot_dimension_numbers<[1], [0], [0], [1], [0, 0, 1, 1], [], []>} : vector<16x32xbf16>, vector<32x128xbf16>, vector<16x128xf32> -> vector<16x128xf32>
    %c0_3 = arith.constant 0 : index
    %c0_4 = arith.constant 0 : index
    %c0_5 = arith.constant 0 : index
    %3 = vector.load %arg4[%c0_3, %c0_4, %c0_5] : memref<3x1x128xf32, #tpu.memory_space<vmem>>, vector<1x1x128xf32>
    %4 = vector.shape_cast %3 : vector<1x1x128xf32> to vector<1x128xf32>
    %5 = vector.broadcast %4 : vector<1x128xf32> to vector<16x128xf32>
    %6 = arith.addf %2, %5 : vector<16x128xf32>
    %cst_6 = arith.constant 0.000000e+00 : f32
    %7 = vector.broadcast %cst_6 : f32 to vector<16x128xf32>
    %8 = arith.maximumf %6, %7 : vector<16x128xf32>
    %9 = arith.truncf %8 : vector<16x128xf32> to vector<16x128xbf16>
    %c0_7 = arith.constant 0 : index
    %c0_8 = arith.constant 0 : index
    %c0_9 = arith.constant 0 : index
    %10 = vector.load %arg3[%c0_7, %c0_8, %c0_9] : memref<2x128x128xbf16, #tpu.memory_space<vmem>>, vector<1x128x128xbf16>
    %11 = vector.shape_cast %10 : vector<1x128x128xbf16> to vector<128x128xbf16>
    %cst_10 = arith.constant dense<0.000000e+00> : vector<16x128xf32>
    %12 = tpu.matmul %9, %11, %cst_10 {dimension_numbers = #tpu.dot_dimension_numbers<[1], [0], [0], [1], [0, 0, 1, 1], [], []>} : vector<16x128xbf16>, vector<128x128xbf16>, vector<16x128xf32> -> vector<16x128xf32>
    %c1 = arith.constant 1 : index
    %c0_11 = arith.constant 0 : index
    %c0_12 = arith.constant 0 : index
    %13 = vector.load %arg4[%c1, %c0_11, %c0_12] : memref<3x1x128xf32, #tpu.memory_space<vmem>>, vector<1x1x128xf32>
    %14 = vector.shape_cast %13 : vector<1x1x128xf32> to vector<1x128xf32>
    %15 = vector.broadcast %14 : vector<1x128xf32> to vector<16x128xf32>
    %16 = arith.addf %12, %15 : vector<16x128xf32>
    %cst_13 = arith.constant 0.000000e+00 : f32
    %17 = vector.broadcast %cst_13 : f32 to vector<16x128xf32>
    %18 = arith.maximumf %16, %17 : vector<16x128xf32>
    %19 = arith.truncf %18 : vector<16x128xf32> to vector<16x128xbf16>
    %c1_14 = arith.constant 1 : index
    %c0_15 = arith.constant 0 : index
    %c0_16 = arith.constant 0 : index
    %20 = vector.load %arg3[%c1_14, %c0_15, %c0_16] : memref<2x128x128xbf16, #tpu.memory_space<vmem>>, vector<1x128x128xbf16>
    %21 = vector.shape_cast %20 : vector<1x128x128xbf16> to vector<128x128xbf16>
    %cst_17 = arith.constant dense<0.000000e+00> : vector<16x128xf32>
    %22 = tpu.matmul %19, %21, %cst_17 {dimension_numbers = #tpu.dot_dimension_numbers<[1], [0], [0], [1], [0, 0, 1, 1], [], []>} : vector<16x128xbf16>, vector<128x128xbf16>, vector<16x128xf32> -> vector<16x128xf32>
    %c2 = arith.constant 2 : index
    %c0_18 = arith.constant 0 : index
    %c0_19 = arith.constant 0 : index
    %23 = vector.load %arg4[%c2, %c0_18, %c0_19] : memref<3x1x128xf32, #tpu.memory_space<vmem>>, vector<1x1x128xf32>
    %24 = vector.shape_cast %23 : vector<1x1x128xf32> to vector<1x128xf32>
    %25 = vector.broadcast %24 : vector<1x128xf32> to vector<16x128xf32>
    %26 = arith.addf %22, %25 : vector<16x128xf32>
    %27 = arith.truncf %26 : vector<16x128xf32> to vector<16x128xbf16>
    %c0_20 = arith.constant 0 : index
    %c0_21 = arith.constant 0 : index
    %28 = vector.load %arg5[%c0_20, %c0_21] : memref<16x128xbf16, #tpu.memory_space<vmem>>, vector<16x128xbf16>
    tpu.vector_store %arg5[%c0_20, %c0_21], %27 {strides = array<i32>} : memref<16x128xbf16, #tpu.memory_space<vmem>>, vector<16x128xbf16>,
    return
  }
  func.func @transform_0(%arg0: i32) -> (i32, i32) {
    %c0_i32 = arith.constant 0 : i32
    %c0_i32_0 = arith.constant 0 : i32
    return %arg0, %c0_i32 : i32, i32
  }
  func.func @transform_1(%arg0: i32) -> (i32, i32) {
    %c0_i32 = arith.constant 0 : i32
    %c0_i32_0 = arith.constant 0 : i32
    %c0_i32_1 = arith.constant 0 : i32
    return %c0_i32, %c0_i32_0 : i32, i32
  }
  func.func @transform_2(%arg0: i32) -> (i32, i32, i32) {
    %c0_i32 = arith.constant 0 : i32
    %c0_i32_0 = arith.constant 0 : i32
    %c0_i32_1 = arith.constant 0 : i32
    %c0_i32_2 = arith.constant 0 : i32
    return %c0_i32, %c0_i32_0, %c0_i32_1 : i32, i32, i32
  }
  func.func @transform_3(%arg0: i32) -> (i32, i32, i32) {
    %c0_i32 = arith.constant 0 : i32
    %c0_i32_0 = arith.constant 0 : i32
    %c0_i32_1 = arith.constant 0 : i32
    %c0_i32_2 = arith.constant 0 : i32
    return %c0_i32, %c0_i32_0, %c0_i32_1 : i32, i32, i32
  }
  func.func @transform_4(%arg0: i32) -> (i32, i32) {
    %c0_i32 = arith.constant 0 : i32
    %c0_i32_0 = arith.constant 0 : i32
    return %arg0, %c0_i32 : i32, i32
  }
}

</mosaic_0001>

<bundles_post_ra>
// kernel: mlp_forward_fp.1
= control target key start
LH: loop header
LB: loop body
LE: loop exit
PB: predicated region body
PF: predicated region fallthrough
CT: control target
= control target key end

     0   :  { %9 = vsyncpa [#allocation3], 0  ;;  %s504_s15 = smov [#allocation2]   ;;  %s582_s0 = inlined_call_operand.vmem [shape: bf16[16,32], index: 0, kind: input, shape index: {}]   ;;  %s583_s1 = inlined_call_operand.vmem [shape: bf16[32,128], index: 1, kind: input, shape index: {}]   ;;  %s584_s2 = inlined_call_operand.hbm [shape: bf16[2,128,128], index: 2, kind: input, shape index: {}]   ;;  %s585_s3 = inlined_call_operand.vmem [shape: f32[3,1,128], index: 3, kind: input, shape index: {}]   ;;  %s586_s4 = inlined_call_operand.vmem [shape: bf16[16,128], index: 4, kind: output, shape index: {}]  }
   0x1   :  { %s19_s16 = sshll.u32 %s504_s15, 4  ;;  %s20_s16 = int_to_ptr.vmem [resolvable:$true] %s19_s16 }
   0x2   :  { %s490_s17 = scalar_lea.vmem %s20_s16, 2048  ;;  %p495_p1 = scmp.lt.s32.totalorder %s20_s16, %s20_s16 }
   0x3   :  { %p491_p0 = scmp.ne.s32.totalorder %s20_s16, %s490_s17  ;;  %p496_p2 = scmp.lt.s32.totalorder %s490_s17, %s490_s17 }
   0x5   :  { %p497_p3 = por %p496_p2, %p495_p1 }
   0x7   :  { %p498_p4 = pnand %p497_p3, %p491_p0 }
   0x9   :  { %501 = shalt.err (!%p498_p4)
}
   0xa   :  { %s505_s18 = smov 64   ;;  %s506_s19 = smov 4  }
   0xb   :  { %25 = dma.hbm_to_vmem [thread:$0]  %s584_s2, 2048, %s20_s16, [#allocation3], %s505_s18, %s505_s18, %s506_s19  }
   0xc   :  { %502 = dma.done.wait [#allocation3], 2048  }
   0xd   :  { %503 = vsyncadd [#allocation3], 4294965248  ;;  %v507_v0 = vmov 0.0   ;;  %vm508_vm0 = vmmov 0   ;;  %v463_v1 = vld [vmem:[%s583_s1 + $0x8] sm:$0xff]   ;;  %v464_v2 = vld [vmem:[%s583_s1] sm:$0xff]  }
   0xe   :  { %410 = vmatprep.subr.bf16.mxu0 %v507_v0  ;;  %414 = vmatprep.mubr.msk.bf16.mxu0 %vm508_vm0, %v507_v0  ;;  %v466_v3 = vld [vmem:[#allocation2 + $0x38] sm:$0xff]   ;;  %v465_v4 = vld [vmem:[%s582_s0] sm:$0xff]   ;;  %v467_v5 = vld [vmem:[#allocation2 + $0x30] sm:$0xff]   ;;  %vm62_vm1 = vcmask 261120  }
   0xf   :  { %418 = vmatprep.subr.bf16.mxu1 %v507_v0  ;;  %434 = vmatprep.mubr.msk.bf16.mxu1 %vm508_vm0, %v507_v0  ;;  %v468_v6 = vld [vmem:[#allocation2 + $0x28] sm:$0xff]   ;;  %v469_v7 = vld [vmem:[#allocation2 + $0x20] sm:$0xff]   ;;  %v470_v8 = vld [vmem:[#allocation2 + $0x18] sm:$0xff]  }
  0x10   :  { %411 = vmatpush3.bf16.msra.mxu0 %v463_v1  ;;  %419 = vmatpush3.bf16.msra.mxu1 %v466_v3  ;;  %v471_v9 = vld [vmem:[#allocation2 + $0x10] sm:$0xff]   ;;  %v472_v10 = vld [vmem:[#allocation2 + $0x8] sm:$0xff]   ;;  %v473_v11 = vld [vmem:[#allocation2] sm:$0xff]  }
  0x11   :  { %412 = vmatprep.subr.bf16.mxu0 %v507_v0  ;;  %420 = vmatprep.subr.bf16.mxu1 %v507_v0  ;;  %v474_v12 = vld [vmem:[#allocation2 + $0x78] sm:$0xff]   ;;  %v475_v13 = vld [vmem:[#allocation2 + $0x70] sm:$0xff]   ;;  %v476_v14 = vld [vmem:[#allocation2 + $0x68] sm:$0xff]  }
  0x12   :  { %v477_v15 = vld [vmem:[#allocation2 + $0x60] sm:$0xff]   ;;  %v478_v16 = vld [vmem:[#allocation2 + $0x58] sm:$0xff]   ;;  %v479_v27 = vld [vmem:[#allocation2 + $0x50] sm:$0xff]  }
  0x13   :  { %v355_v17 = vld [vmem:[%s585_s3] ss:$0 sm:$0xff]  ;;  %v480_v28 = vld [vmem:[#allocation2 + $0x48] sm:$0xff]   ;;  %v361_v30 = vld [vmem:[%s585_s3 + $0x1] ss:$0 sm:$0xff] }
  0x14   :  { %413 = vmatpush3.bf16.msra.mxu0 %v464_v2  ;;  %421 = vmatpush3.bf16.msra.mxu1 %v467_v5  ;;  %v481_v29 = vld [vmem:[#allocation2 + $0x40] sm:$0xff]  }
  0x15   :  { %438 = vmatprep.subr.bf16.mxu0 %v507_v0  ;;  %422 = vmatprep.subr.bf16.mxu1 %v507_v0  ;;  %v371_v41 = vld [vmem:[%s585_s3 + $0x2] ss:$0 sm:$0xff] }
  0x17   :  { %415 = vmatmul.mubr.msk.bf16.vlgmr.msra.gmra.mxu0 %vm62_vm1, %v465_v4 }
  0x18   :  { %454 = vmatprep.mubr.msk.bf16.mxu0 %vm508_vm0, %v507_v0  ;;  %423 = vmatpush3.bf16.msra.mxu1 %v468_v6 }
  0x19   :  { %424 = vmatprep.subr.bf16.mxu1 %v507_v0  ;;  %439 = vmatpush3.bf16.msra.mxu0 %v474_v12 }
  0x1a   :  { %440 = vmatprep.subr.bf16.mxu0 %v507_v0 }
  0x1c   :  { %425 = vmatpush3.bf16.msra.mxu1 %v469_v7 }
  0x1d   :  { %426 = vmatprep.subr.bf16.mxu1 %v507_v0  ;;  %441 = vmatpush3.bf16.msra.mxu0 %v475_v13 }
  0x1e   :  { %442 = vmatprep.subr.bf16.mxu0 %v507_v0 }
  0x20   :  { %427 = vmatpush3.bf16.msra.mxu1 %v470_v8 }
  0x21   :  { %428 = vmatprep.subr.bf16.mxu1 %v507_v0  ;;  %443 = vmatpush3.bf16.msra.mxu0 %v476_v14 }
  0x22   :  { %444 = vmatprep.subr.bf16.mxu0 %v507_v0 }
  0x24   :  { %429 = vmatpush3.bf16.msra.mxu1 %v471_v9 }
  0x25   :  { %430 = vmatprep.subr.bf16.mxu1 %v507_v0  ;;  %445 = vmatpush3.bf16.msra.mxu0 %v477_v15 }
  0x26   :  { %446 = vmatprep.subr.bf16.mxu0 %v507_v0 }
  0x28   :  { %431 = vmatpush3.bf16.msra.mxu1 %v472_v10 }
  0x29   :  { %432 = vmatprep.subr.bf16.mxu1 %v507_v0  ;;  %447 = vmatpush3.bf16.msra.mxu0 %v478_v16 }
  0x2a   :  { %448 = vmatprep.subr.bf16.mxu0 %v507_v0 }
  0x2c   :  { %433 = vmatpush3.bf16.msra.mxu1 %v473_v11 }
  0x2d   :  { %449 = vmatpush3.bf16.msra.mxu0 %v479_v27 }
  0x2e   :  { %450 = vmatprep.subr.bf16.mxu0 %v507_v0 }
  0x31   :  { %451 = vmatpush3.bf16.msra.mxu0 %v480_v28 }
  0x32   :  { %452 = vmatprep.subr.bf16.mxu0 %v507_v0 }
  0x35   :  { %453 = vmatpush3.bf16.msra.mxu0 %v481_v29 }
  0xd7   :  { %v100_v18 = vpop.f32.mrf.mxu0 }
  0xd8   :  { %v101_v20 = vadd.f32 %v355_v17, %v100_v18 }
  0xd9   :  { %v416_v19 = vpop.f32.mrf.mxu0 }
  0xda   :  { %v107_v24 = vmax.f32 %v101_v20, 0.0 }
  0xdb   :  { %v103_v21 = vpop.f32.mrf.mxu0 }
  0xdc   :  { %v104_v22 = vadd.f32 %v355_v17, %v103_v21 }
  0xdd   :  { %v417_v23 = vpop.f32.mrf.mxu0 }
  0xde   :  { %v108_v25 = vmax.f32 %v104_v22, 0.0 }
  0xe0   :  { %v109_v26 = vpack.c.bf16 %v108_v25, %v107_v24 }
  0xe2   :  { %435 = vmatmul.mubr.bf16.vlgmr.msra.gmra.mxu1 %v109_v26 }
 0x1a2   :  { %v216_v31 = vpop.f32.mrf.mxu1 }
 0x1a3   :  { %v217_v33 = vadd.f32 %v361_v30, %v216_v31 }
 0x1a4   :  { %v436_v32 = vpop.f32.mrf.mxu1 }
 0x1a5   :  { %v223_v37 = vmax.f32 %v217_v33, 0.0 }
 0x1a6   :  { %v219_v34 = vpop.f32.mrf.mxu1 }
 0x1a7   :  { %v220_v35 = vadd.f32 %v361_v30, %v219_v34 }
 0x1a8   :  { %v437_v36 = vpop.f32.mrf.mxu1 }
 0x1a9   :  { %v224_v38 = vmax.f32 %v220_v35, 0.0 }
 0x1ab   :  { %v225_v39 = vpack.c.bf16 %v224_v38, %v223_v37 }
 0x1ad   :  { %455 = vmatmul.mubr.bf16.vlgmr.msra.gmra.mxu0 %v225_v39 }
 0x26d   :  { %v333_v40 = vpop.f32.mrf.mxu0 }
 0x26e   :  { %v334_v44 = vadd.f32 %v371_v41, %v333_v40 }
 0x26f   :  { %v456_v42 = vpop.f32.mrf.mxu0 }
 0x271   :  { %v336_v43 = vpop.f32.mrf.mxu0 }
 0x272   :  { %v337_v45 = vadd.f32 %v371_v41, %v336_v43 }
 0x273   :  { %v457_v46 = vpop.f32.mrf.mxu0 }
 0x274   :  { %v387_v47 = vpack.c.bf16 %v337_v45, %v334_v44 }
 0x276   :  { %388 = vst [vmem:[%s586_s4] sm:$0xff] %v387_v47  }
 0x277   :  { %354 = vsyncpa [#allocation3], 1 }

</bundles_post_ra>
